<compile_context>
chip_gen: v6e
topology: v6e:2x2x1
jax: 0.10.0
libtpu: 0.0.40
codegen_flags: <defaults>
</compile_context>

<pallas_src>
import jax
import jax.numpy as jnp
import numpy as np
from jax import lax
from jax.experimental import pallas as pl
from jax.experimental.pallas import tpu as pltpu


def _beamform_matmul_kernel(x_ref, w_ref, out_ref):
    # One MXU matmul per N-tile: (tile_n, 2*n_antenna) @ (2*n_antenna, out_w).
    out_ref[...] = jnp.dot(x_ref[...], w_ref[...],
                           preferred_element_type=jnp.float32).astype(out_ref.dtype)


def _build_normalized_hybrid_weights(theta, real_kernel, imag_kernel, scale):
    """Fused, normalized hybrid weights: (2*n_antenna, n_beam*2*n_stream).

    Parameter-sized one-shot work (O(n_beam*n_antenna*n_rf*n_stream)); plain JAX
    in the wrapper so it is not re-done on every Pallas grid step.
    """
    n_beam, n_antenna, n_rf = theta.shape
    n_stream = real_kernel.shape[-1]

    inv_scale = jnp.float32(1.0 / scale)
    ra = inv_scale * jnp.cos(theta)                       # analog real kernel
    ia = inv_scale * jnp.sin(theta)                       # analog imag kernel

    analog = jnp.concatenate(
        [jnp.concatenate([ra, -ia], axis=-1),
         jnp.concatenate([ia, ra], axis=-1)], axis=1)     # (b, 2*na, 2*n_rf)
    digital = jnp.concatenate(
        [jnp.concatenate([real_kernel, -imag_kernel], axis=-1),
         jnp.concatenate([imag_kernel, real_kernel], axis=-1)],
        axis=1)                                           # (b, 2*n_rf, 2*ns)

    hybrid = jnp.einsum('bij,bjk->bik', analog, digital)  # (b, 2*na, 2*ns)

    # hybrid has block structure [[hr, -hi], [hi, hr]], so the complex Frobenius
    # norm sqrt(sum(hr^2 + hi^2)) == sqrt(0.5 * sum(hybrid^2)); no column mask.
    inv_norm = lax.rsqrt(0.5 * jnp.sum(hybrid * hybrid, axis=(1, 2)))
    hyb_n = hybrid * inv_norm[:, None, None]              # (b, 2*na, 2*ns)

    # TODO(synk): use_bias=True path (bias added to the normalized hybrid before
    # the final matmul) not wired in; module default is use_bias=False.

    # (b, 2*na, 2*ns) -> (2*na, b, 2*ns) -> (2*na, b*2*ns): x @ W then reshapes
    # directly to (N, n_beam, 2*n_stream) with no post-kernel transpose.
    return jnp.transpose(hyb_n, (1, 0, 2)).reshape(
        2 * n_antenna, n_beam * 2 * n_stream)


def _round_up(x, m):
    return ((x + m - 1) // m) * m


def hybrid_beamformer(x, theta, real_kernel, imag_kernel, scale=1.0, *,
                      block_n=8192, compute_dtype=None, out_dtype=jnp.float32,
                      small_n_fallback_rows=512):
    """Pallas implementation of Hybrid_Beamformer.forward (use_bias=False).

    compute_dtype: optionally cast x and W to e.g. jnp.bfloat16 at the matmul
      boundary (accumulation stays f32) — halves the HBM read streams (v5e win).
    out_dtype: dtype of the output written to HBM (f32 default; bf16 halves the
      dominant write stream if downstream tolerates it).
    small_n_fallback_rows: below this N, skip pallas_call (launch overhead would
      dominate) and use a plain fused jnp.dot.
    """
    n_beam, n_antenna, n_rf = theta.shape
    n_stream = real_kernel.shape[-1]
    if x.ndim != 2 or x.shape[1] != 2 * n_antenna:
        raise ValueError("expected x of shape (N, 2*n_antenna)")
    N = x.shape[0]
    in_dim = 2 * n_antenna
    out_w = n_beam * 2 * n_stream

    # --- one-shot weight precompute (plain JAX, fused across beams) ---
    W = _build_normalized_hybrid_weights(theta, real_kernel, imag_kernel, scale)

    if compute_dtype is not None:
        x = x.astype(compute_dtype)
        W = W.astype(compute_dtype)

    # --- small-N fast path: kernel overhead can never be hidden here ---
    if N < small_n_fallback_rows:
        out = jnp.dot(x, W, preferred_element_type=jnp.float32).astype(out_dtype)
        return jnp.squeeze(out.reshape(N, n_beam, 2 * n_stream))

    # --- choose tile_n / grid (no padding of x, no post-kernel slice) ---
    # Keep at least 2 (and an even number of) steps when N is large so the
    # "parallel" grid axis balances across v7x's two TensorCores.
    min_steps = 2 if N >= 2048 else 1
    n_steps = max(min_steps, pl.cdiv(N, block_n))
    if n_steps > 1 and n_steps % 2 != 0:
        n_steps += 1
    if n_steps == 1:
        tile_n = N                       # block == full array dim (always legal)
    else:
        tile_n = _round_up(pl.cdiv(N, n_steps), 8)   # (8,128) sublane rule
        n_steps = pl.cdiv(N, tile_n)     # ragged final block handled by Pallas

    out_itemsize = jnp.dtype(out_dtype).itemsize
    cost = pl.CostEstimate(
        flops=2 * N * in_dim * out_w,
        transcendentals=0,
        bytes_accessed=int(x.size * x.dtype.itemsize
                           + W.size * W.dtype.itemsize
                           + N * out_w * out_itemsize))

    out = pl.pallas_call(
        _beamform_matmul_kernel,
        out_shape=jax.ShapeDtypeStruct((N, out_w), out_dtype),
        grid=(n_steps,),
        in_specs=[
            pl.BlockSpec((tile_n, in_dim), lambda i: (i, 0)),
            pl.BlockSpec((in_dim, out_w), lambda i: (0, 0)),
        ],
        out_specs=pl.BlockSpec((tile_n, out_w), lambda i: (i, 0)),
        compiler_params=pltpu.CompilerParams(
            dimension_semantics=("parallel",)),
        cost_estimate=cost,
    )(x, W)

    out = out.reshape(N, n_beam, 2 * n_stream)
    # torch-style .squeeze(): drop all unit dims (matches the module's forward).
    return jnp.squeeze(out)


def hybrid_beamformer_reference(x, theta, real_kernel, imag_kernel, scale=1.0):
    """Pure-JAX reference matching the PyTorch forward (use_bias=False)."""
    n_beam, n_antenna, _ = theta.shape
    n_stream = real_kernel.shape[-1]
    ra = jnp.cos(theta) / scale
    ia = jnp.sin(theta) / scale
    analog = jnp.concatenate([jnp.concatenate([ra, -ia], -1),
                              jnp.concatenate([ia, ra], -1)], axis=1)
    digital = jnp.concatenate([jnp.concatenate([real_kernel, -imag_kernel], -1),
                               jnp.concatenate([imag_kernel, real_kernel], -1)],
                              axis=1)
    hybrid = jnp.einsum('bij,bjk->bik', analog, digital)
    rp = hybrid[:, :n_antenna, :n_stream]
    ip = hybrid[:, n_antenna:, :n_stream]
    norm = jnp.sqrt(jnp.sum(rp * rp + ip * ip, axis=(1, 2)))
    hyb_n = hybrid / norm[:, None, None]
    out = jnp.einsum('nd,bdk->nbk', x, hyb_n)
    return jnp.squeeze(out)


if __name__ == "__main__":
    # Small, module-consistent shapes.
    n_antenna, n_beam, n_rf, n_stream = 16, 8, 4, 1
    batch = 4
    scale = 1.0

    key = jax.random.PRNGKey(0)
    k_theta, k_rk, k_ik, k_x, k_x2 = jax.random.split(key, 5)

    # theta ~ Uniform(0, 2*pi)
    theta = jax.random.uniform(
        k_theta, (n_beam, n_antenna, n_rf), jnp.float32,
        minval=0.0, maxval=2.0 * np.pi)

    # xavier_normal_ with gain 1/sqrt(2) on a (n_beam, n_rf, n_stream) tensor.
    fan_in = n_rf * n_stream
    fan_out = n_beam * n_stream
    std = (1.0 / np.sqrt(2.0)) * np.sqrt(2.0 / (fan_in + fan_out))
    real_kernel = std * jax.random.normal(k_rk, (n_beam, n_rf, n_stream),
                                          jnp.float32)
    imag_kernel = std * jax.random.normal(k_ik, (n_beam, n_rf, n_stream),
                                          jnp.float32)

    # Input: (N, 2*n_antenna) real/imag concatenated along the feature axis.
    x = jax.random.normal(k_x, (batch, 2 * n_antenna), jnp.float32)

    # Small case: force the Pallas path (disable the small-N fallback) so the
    # kernel itself is exercised and verified.
    out = hybrid_beamformer(x, theta, real_kernel, imag_kernel, scale,
                            small_n_fallback_rows=0)
    out = jax.block_until_ready(out)
    ref = hybrid_beamformer_reference(x, theta, real_kernel, imag_kernel, scale)
    np.testing.assert_allclose(np.asarray(out), np.asarray(ref),
                               rtol=1e-5, atol=1e-5)

    # Multi-tile ragged-N path (no padding/slicing in the wrapper), balanced
    # even step count: block_n=1024 -> 4 steps of tile_n=520 for N=2053.
    batch_big = 2053
    x_big = jax.random.normal(k_x2, (batch_big, 2 * n_antenna), jnp.float32)
    out_big = hybrid_beamformer(x_big, theta, real_kernel, imag_kernel, scale,
                                block_n=1024)
    out_big = jax.block_until_ready(out_big)
    ref_big = hybrid_beamformer_reference(x_big, theta, real_kernel, imag_kernel,
                                          scale)
    np.testing.assert_allclose(np.asarray(out_big), np.asarray(ref_big),
                               rtol=1e-5, atol=1e-5)

    print("KERNEL_OK")
</pallas_src>

<mosaic_0001>
module attributes {stable_mosaic.version = 11 : i64} {
  func.func @_beamform_matmul_kernel(%arg0: i32, %arg1: memref<4x32xf32, #tpu.memory_space<vmem>>, %arg2: memref<32x16xf32, #tpu.memory_space<vmem>>, %arg3: memref<4x16xf32, #tpu.memory_space<vmem>>) attributes {dimension_semantics = [#tpu.dimension_semantics<parallel>], iteration_bounds = array<i64: 1>, scalar_prefetch = 0 : i64, scratch_operands = 0 : i64, tpu.core_type = #tpu.core_type<tc>, window_params = [{transform_indices = @transform_0, window_bounds = array<i64: 4, 32>}, {pipeline_mode = #tpu.pipeline_mode<synchronous>, transform_indices = @transform_1, window_bounds = array<i64: 32, 16>}, {transform_indices = @transform_2, window_bounds = array<i64: 4, 16>}]} {
    %c0 = arith.constant 0 : index
    %c0_0 = arith.constant 0 : index
    %0 = vector.load %arg1[%c0, %c0_0] : memref<4x32xf32, #tpu.memory_space<vmem>>, vector<4x32xf32>
    %c0_1 = arith.constant 0 : index
    %c0_2 = arith.constant 0 : index
    %1 = vector.load %arg2[%c0_1, %c0_2] : memref<32x16xf32, #tpu.memory_space<vmem>>, vector<32x16xf32>
    %cst = arith.constant dense<0.000000e+00> : vector<4x16xf32>
    %2 = tpu.matmul %0, %1, %cst {dimension_numbers = #tpu.dot_dimension_numbers<[1], [0], [0], [1], [0, 0, 1, 1], [], []>} : vector<4x32xf32>, vector<32x16xf32>, vector<4x16xf32> -> vector<4x16xf32>
    %c0_3 = arith.constant 0 : index
    %c0_4 = arith.constant 0 : index
    %3 = vector.load %arg3[%c0_3, %c0_4] : memref<4x16xf32, #tpu.memory_space<vmem>>, vector<4x16xf32>
    tpu.vector_store %arg3[%c0_3, %c0_4], %2 {strides = array<i32>} : memref<4x16xf32, #tpu.memory_space<vmem>>, vector<4x16xf32>,
    return
  }
  func.func @transform_0(%arg0: i32) -> (i32, i32) {
    %c0_i32 = arith.constant 0 : i32
    %c0_i32_0 = arith.constant 0 : i32
    return %arg0, %c0_i32 : i32, i32
  }
  func.func @transform_1(%arg0: i32) -> (i32, i32) {
    %c0_i32 = arith.constant 0 : i32
    %c0_i32_0 = arith.constant 0 : i32
    %c0_i32_1 = arith.constant 0 : i32
    return %c0_i32, %c0_i32_0 : i32, i32
  }
  func.func @transform_2(%arg0: i32) -> (i32, i32) {
    %c0_i32 = arith.constant 0 : i32
    %c0_i32_0 = arith.constant 0 : i32
    return %arg0, %c0_i32 : i32, i32
  }
}

</mosaic_0001>

<bundles_post_ra>
// kernel: tpu_custom_call.1
= control target key start
LH: loop header
LB: loop body
LE: loop exit
PB: predicated region body
PF: predicated region fallthrough
CT: control target
= control target key end

     0   :  { %v149_v1 = vmov 0.0   ;;  %vm150_vm0 = vmmov 0   ;;  %s185_s0 = inlined_call_operand.vmem [shape: f32[4,32], index: 0, kind: input, shape index: {}]   ;;  %s186_s1 = inlined_call_operand.vmem [shape: f32[32,16], index: 1, kind: input, shape index: {}]   ;;  %s187_s2 = inlined_call_operand.hbm [shape: f32[4,16], index: 2, kind: output, shape index: {}]  }
   0x1   :  { %v16_v0 = vld [vmem:[%s186_s1 + $0x18] sm:$0xff]  ;;  %113 = vmatprep.subr.mxu0 %v149_v1  ;;  %v15_v2 = vld [vmem:[%s186_s1 + $0x10] sm:$0xff]  ;;  %121 = vmatprep.mubr.msk.f32.mxu0 %vm150_vm0, %v149_v1 }
   0x2   :  { %7 = vsyncpa [#allocation3], 0  ;;  %114 = vmatpush3.msra.mxu0 %v16_v0  ;;  %v14_v3 = vld [vmem:[%s186_s1 + $0x8] sm:$0xff]  ;;  %v13_v4 = vld [vmem:[%s186_s1] sm:$0xff]  ;;  %vm17_vm1 = vcmask 261120   ;;  %s151_s19 = smov [#allocation2]  }
   0x3   :  { %115 = vmatprep.subr.mxu0 %v149_v1  ;;  %v12_v5 = vld [vmem:[%s185_s0] sm:$0xf]  ;;  %s99_s20 = sshll.u32 %s151_s19, 4  ;;  %vm91_vm2 = vcmask 125952   ;;  %s100_s20 = int_to_ptr.vmem [resolvable:$true] %s99_s20 }
   0x4   :  { %116 = vmatpush3.msra.mxu0 %v15_v2  ;;  %s127_s21 = scalar_lea.vmem %s100_s20, 64  ;;  %p132_p1 = scmp.lt.s32.totalorder %s100_s20, %s100_s20 }
   0x5   :  { %117 = vmatprep.subr.mxu0 %v149_v1  ;;  %p128_p0 = scmp.ne.s32.totalorder %s100_s20, %s127_s21  ;;  %p133_p2 = scmp.lt.s32.totalorder %s127_s21, %s127_s21 }
   0x6   :  { %118 = vmatpush3.msra.mxu0 %v14_v3 }
   0x7   :  { %119 = vmatprep.subr.mxu0 %v149_v1  ;;  %p134_p3 = por %p133_p2, %p132_p1 }
   0x8   :  { %120 = vmatpush3.msra.mxu0 %v13_v4 }
   0x9   :  { %122 = vmatmul.mubr.msk.f32.vlgmr.msra.gmra.mxu0 %vm17_vm1, %v12_v5  ;;  %p135_p4 = pnand %p134_p3, %p128_p0 }
  0xc9   :  { %v87_v6 = vpop.f32.mrf.mxu0 }
  0xca   :  { %92 = vst.msk [vmem:[#allocation2] sm:$0xf] %vm91_vm2, %v87_v6 }
  0xcb   :  { %v123_v7 = vpop.f32.mrf.mxu0 }
  0xcc   :  { %138 = shalt.err (!%p135_p4)
}
  0xcd   :  { %102 = dma.vmem_to_hbm [thread:$0]  %s100_s20, 64, %s187_s2, [#allocation3]  }
  0xce   :  { %147 = dma.done.wait [#allocation3], 64  }
  0xcf   :  { %148 = vsyncadd [#allocation3], 4294967232 }
  0xd0   :  { %106 = vsyncpa [#allocation3], 1 }

</bundles_post_ra>
